<compile_context>
chip_gen: v5e
topology: v5e:2x2
jax: 0.10.0
libtpu: 0.0.40
codegen_flags: <defaults>
</compile_context>

<pallas_src>
import functools

import jax
import jax.numpy as jnp
from jax import lax
from jax.experimental import pallas as pl
from jax.experimental.pallas import tpu as pltpu


# Conservative double-buffered-block budget that fits every generation
# (v7x has only 64 MiB VMEM per TensorCore; v5e/v6e have 128 MiB).
_VMEM_BLOCK_BUDGET = 40 * 1024 * 1024
_VMEM_LIMIT_BYTES = 48 * 1024 * 1024


def _round_up(x, m):
    return ((x + m - 1) // m) * m


def _make_kernel(tc, tt, t_valid, mask_t):
    """Build the kernel body with the tile sizes / T-mask baked in as Python constants."""

    def kernel(x_ref, w_ref, fb_ref, out_ref, m_sc, l_sc, r_sc):
        # x_ref:  (1, tt, D)   current (batch, T-tile) slab of x (compute dtype, e.g. bf16)
        # w_ref:  (D, 2*tc)    [U.weight^T tile | final.weight^T tile], resident across B and T
        # fb_ref: (1, tc)      final.bias tile (f32)
        # out_ref:(1, 1, tc)   logits tile for this (class-tile, batch)
        # m_sc/l_sc/r_sc: (1, tc) f32 running max / softmax denom / fused readout numerator
        t = pl.program_id(2)

        @pl.when(t == 0)
        def _init():
            m_sc[...] = jnp.full_like(m_sc, -jnp.inf)
            l_sc[...] = jnp.zeros_like(l_sc)
            r_sc[...] = jnp.zeros_like(r_sc)

        x = x_ref[0]          # (tt, D), native compute dtype -> full-rate MXU
        w = w_ref[...]        # (D, 2*tc)

        # One NN-layout matmul feeding both the attention scores and the per-timestep readout:
        #   sy[:, :tc] = x . U.weight^T       (scores s)
        #   sy[:, tc:] = x . final.weight^T   (readout y)
        sy = jnp.dot(x, w, preferred_element_type=jnp.float32)   # (tt, 2*tc), f32 accum on MXU
        s = sy[:, :tc]
        y = sy[:, tc:]

        if mask_t:
            # Only needed when T was padded: padded timesteps must not contribute to the softmax.
            row = lax.broadcasted_iota(jnp.int32, (tt, 1), 0)
            valid = (t * tt + row) < t_valid
            s = jnp.where(valid, s, jnp.float32(-jnp.inf))

        # Online softmax update over the T axis (sublane axis of s / y).
        m_prev = m_sc[...]                                             # (1, tc)
        m_new = jnp.maximum(m_prev, jnp.max(s, axis=0, keepdims=True))
        corr = jnp.exp(m_prev - m_new)                                 # (1, tc)
        p = jnp.exp(s - m_new)                                         # (tt, tc)
        l_sc[...] = corr * l_sc[...] + jnp.sum(p, axis=0, keepdims=True)
        r_sc[...] = corr * r_sc[...] + jnp.sum(p * y, axis=0, keepdims=True)
        m_sc[...] = m_new

        @pl.when(t == pl.num_programs(2) - 1)
        def _finalize():
            # Runs once per (class-tile, batch): exact divide is effectively free here.
            logits = r_sc[...] / l_sc[...] + fb_ref[...]
            out_ref[...] = logits[None].astype(out_ref.dtype)          # (1, 1, tc)

    return kernel


def output_layer(x, u_weight, final_weight, final_bias, *, compute_dtype=jnp.bfloat16):
    """x: (B, T, D); u_weight/final_weight: (C, D); final_bias: (C,) -> logits (B, C) in f32."""
    B, T, D = x.shape
    C = u_weight.shape[0]
    itemsize = jnp.dtype(compute_dtype).itemsize

    # --- T tile: sublane aligned, evenly split, capped at 512 rows per step.
    t8 = _round_up(T, 8)
    tt_cap = min(512, t8)
    n_tt = -(-t8 // tt_cap)
    tt = _round_up(-(-t8 // n_tt), 8)
    T_pad = tt * n_tt
    mask_t = T_pad != T

    # --- C tile: lane aligned, VMEM/dtype-aware budget (2 buffers for x, stacked weights, bias, out).
    x_block_bytes = 2 * tt * D * itemsize                 # double-buffered x block
    per_tc_bytes = (2 * 2 * D * itemsize                  # double-buffered stacked-weight columns
                    + 2 * 4                               # bias (f32), double-buffered
                    + 2 * 4                               # output (f32), double-buffered
                    + 3 * 4)                              # m / l / r scratch
    tc_budget = max(128, ((_VMEM_BLOCK_BUDGET - x_block_bytes) // per_tc_bytes // 128) * 128)

    c128 = _round_up(C, 128)
    tc_cap = min(tc_budget, 2048, c128)
    n_ct = -(-c128 // tc_cap)
    if B == 1 and n_ct == 1 and c128 > 128:
        n_ct = 2                                          # keep both v7x TensorCores busy
    tc = _round_up(-(-c128 // n_ct), 128)
    C_pad = tc * n_ct

    # --- Pad + cast inputs; build the stacked NN-layout weight: per class tile [U^T | final^T].
    x_p = x
    if T_pad != T:
        x_p = jnp.pad(x_p, ((0, 0), (0, T_pad - T), (0, 0)))
    x_p = x_p.astype(compute_dtype)

    uwT = jnp.pad(u_weight, ((0, C_pad - C), (0, 0))).T.astype(compute_dtype)       # (D, C_pad)
    fwT = jnp.pad(final_weight, ((0, C_pad - C), (0, 0))).T.astype(compute_dtype)   # (D, C_pad)
    w_stacked = jnp.concatenate(
        [uwT.reshape(D, n_ct, 1, tc), fwT.reshape(D, n_ct, 1, tc)], axis=2
    ).reshape(D, n_ct * 2 * tc)

    fb_p = jnp.pad(final_bias, (0, C_pad - C)).astype(jnp.float32).reshape(1, C_pad)

    # --- Advisory cost estimate reflecting actual HBM traffic (x streamed once per class tile,
    #     weights streamed exactly once thanks to the C-outermost grid).
    cost = pl.CostEstimate(
        flops=4 * B * T_pad * D * C_pad,
        transcendentals=B * C_pad * T_pad,
        bytes_accessed=(n_ct * B * T_pad * D * itemsize
                        + D * 2 * C_pad * itemsize
                        + C_pad * 4
                        + B * C_pad * 4))

    kernel = _make_kernel(tc, tt, T, mask_t)

    out = pl.pallas_call(
        kernel,
        out_shape=jax.ShapeDtypeStruct((B, 1, C_pad), jnp.float32),
        grid_spec=pltpu.PrefetchScalarGridSpec(
            num_scalar_prefetch=0,
            # Class tiles outermost (weights resident across B and T); T (reduction) last.
            grid=(n_ct, B, n_tt),
            in_specs=[
                pl.BlockSpec((1, tt, D), lambda c, b, t: (b, t, 0)),       # x
                pl.BlockSpec((D, 2 * tc), lambda c, b, t: (0, c)),         # stacked [U^T | final^T]
                pl.BlockSpec((1, tc), lambda c, b, t: (0, c)),             # final.bias
            ],
            out_specs=pl.BlockSpec((1, 1, tc), lambda c, b, t: (b, 0, c)),
            scratch_shapes=[pltpu.VMEM((1, tc), jnp.float32)] * 3,         # m, l, r
        ),
        compiler_params=pltpu.CompilerParams(
            dimension_semantics=("parallel", "parallel", "arbitrary"),
            vmem_limit_bytes=_VMEM_LIMIT_BYTES),
        cost_estimate=cost,
    )(x_p, w_stacked, fb_p)

    return out.reshape(B, C_pad)[:, :C]


def _xavier_uniform(key, shape, dtype=jnp.float32):
    fan_out, fan_in = shape
    bound = jnp.sqrt(6.0 / (fan_in + fan_out))
    return jax.random.uniform(key, shape, dtype, minval=-bound, maxval=bound)


def _reference(x, u_weight, final_weight, final_bias):
    # Pure-JAX reference mirroring the PyTorch forward (f32 math).
    att = jnp.einsum('cd,btd->bct', u_weight, x)
    alpha = jax.nn.softmax(att, axis=2)
    m = jnp.einsum('bct,btd->bcd', alpha, x)
    return jnp.sum(final_weight[None] * m, axis=2) + final_bias[None]


if __name__ == "__main__":
    B, T, D, C = 2, 8, 32, 8   # batch, seq, input_size, num_classes

    key = jax.random.PRNGKey(0)
    kx, ku, kf, kb = jax.random.split(key, 4)

    x = jax.random.normal(kx, (B, T, D), dtype=jnp.float32)
    u_weight = _xavier_uniform(ku, (C, D))        # LabelWiseAttn.U.weight
    final_weight = _xavier_uniform(kf, (C, D))    # final.weight
    bound = 1.0 / jnp.sqrt(D)
    final_bias = jax.random.uniform(kb, (C,), jnp.float32,
                                    minval=-bound, maxval=bound)  # final.bias

    logits = output_layer(x, u_weight, final_weight, final_bias)
    jax.block_until_ready(logits)
    assert logits.shape == (B, C)

    # The kernel casts inputs to bf16 for the MXU (f32 accumulation). Compare against an f32
    # reference evaluated on the same bf16-quantized inputs so the assertion checks the kernel's
    # math rather than the (intentional) input quantization.
    xq = x.astype(jnp.bfloat16).astype(jnp.float32)
    uq = u_weight.astype(jnp.bfloat16).astype(jnp.float32)
    fq = final_weight.astype(jnp.bfloat16).astype(jnp.float32)
    ref = _reference(xq, uq, fq, final_bias)
    err = jnp.max(jnp.abs(logits - ref))
    assert jnp.allclose(logits, ref, atol=2e-3, rtol=2e-3), f"max abs err = {err}"

    print("KERNEL_OK")
</pallas_src>

<mosaic_0001>
module attributes {stable_mosaic.version = 11 : i64} {
  func.func @kernel(%arg0: i32, %arg1: i32, %arg2: i32, %arg3: memref<1x8x32xbf16, #tpu.memory_space<vmem>>, %arg4: memref<32x256xbf16, #tpu.memory_space<vmem>>, %arg5: memref<1x128xf32, #tpu.memory_space<vmem>>, %arg6: memref<1x1x128xf32, #tpu.memory_space<vmem>>, %arg7: memref<1x128xf32, #tpu.memory_space<vmem>>, %arg8: memref<1x128xf32, #tpu.memory_space<vmem>>, %arg9: memref<1x128xf32, #tpu.memory_space<vmem>>) attributes {dimension_semantics = [#tpu.dimension_semantics<parallel>, #tpu.dimension_semantics<parallel>, #tpu.dimension_semantics<arbitrary>], iteration_bounds = array<i64: 1, 2, 1>, scalar_prefetch = 0 : i64, scratch_operands = 3 : i64, tpu.core_type = #tpu.core_type<tc>, window_params = [{transform_indices = @transform_0, window_bounds = array<i64: 1, 8, 32>}, {transform_indices = @transform_1, window_bounds = array<i64: 32, 256>}, {transform_indices = @transform_2, window_bounds = array<i64: 1, 128>}, {transform_indices = @transform_3, window_bounds = array<i64: 1, 1, 128>}]} {
    %c0_i32 = arith.constant 0 : i32
    %0 = arith.cmpi eq, %arg2, %c0_i32 : i32
    %1 = arith.extui %0 : i1 to i32
    %c0_i32_0 = arith.constant 0 : i32
    %2 = arith.cmpi ne, %1, %c0_i32_0 : i32
    scf.if %2 {
      %cst_22 = arith.constant 0xFF800000 : f32
      %35 = vector.broadcast %cst_22 : f32 to vector<1x128xf32>
      %c0_23 = arith.constant 0 : index
      %c0_24 = arith.constant 0 : index
      %36 = vector.load %arg7[%c0_23, %c0_24] : memref<1x128xf32, #tpu.memory_space<vmem>>, vector<1x128xf32>
      tpu.vector_store %arg7[%c0_23, %c0_24], %35 {strides = array<i32>} : memref<1x128xf32, #tpu.memory_space<vmem>>, vector<1x128xf32>,
      %cst_25 = arith.constant 0.000000e+00 : f32
      %37 = vector.broadcast %cst_25 : f32 to vector<1x128xf32>
      %c0_26 = arith.constant 0 : index
      %c0_27 = arith.constant 0 : index
      %38 = vector.load %arg8[%c0_26, %c0_27] : memref<1x128xf32, #tpu.memory_space<vmem>>, vector<1x128xf32>
      tpu.vector_store %arg8[%c0_26, %c0_27], %37 {strides = array<i32>} : memref<1x128xf32, #tpu.memory_space<vmem>>, vector<1x128xf32>,
      %cst_28 = arith.constant 0.000000e+00 : f32
      %39 = vector.broadcast %cst_28 : f32 to vector<1x128xf32>
      %c0_29 = arith.constant 0 : index
      %c0_30 = arith.constant 0 : index
      %40 = vector.load %arg9[%c0_29, %c0_30] : memref<1x128xf32, #tpu.memory_space<vmem>>, vector<1x128xf32>
      tpu.vector_store %arg9[%c0_29, %c0_30], %39 {strides = array<i32>} : memref<1x128xf32, #tpu.memory_space<vmem>>, vector<1x128xf32>,
    } else {
    }
    %c0 = arith.constant 0 : index
    %c0_1 = arith.constant 0 : index
    %c0_2 = arith.constant 0 : index
    %3 = vector.load %arg3[%c0, %c0_1, %c0_2] : memref<1x8x32xbf16, #tpu.memory_space<vmem>>, vector<1x8x32xbf16>
    %4 = vector.shape_cast %3 : vector<1x8x32xbf16> to vector<8x32xbf16>
    %c0_3 = arith.constant 0 : index
    %c0_4 = arith.constant 0 : index
    %5 = vector.load %arg4[%c0_3, %c0_4] : memref<32x256xbf16, #tpu.memory_space<vmem>>, vector<32x256xbf16>
    %cst = arith.constant dense<0.000000e+00> : vector<8x256xf32>
    %6 = tpu.matmul %4, %5, %cst {dimension_numbers = #tpu.dot_dimension_numbers<[1], [0], [0], [1], [0, 0, 1, 1], [], []>} : vector<8x32xbf16>, vector<32x256xbf16>, vector<8x256xf32> -> vector<8x256xf32>
    %7 = vector.extract_strided_slice %6 {offsets = [0, 0], sizes = [8, 128], strides = [1, 1]} : vector<8x256xf32> to vector<8x128xf32>
    %8 = vector.extract_strided_slice %6 {offsets = [0, 128], sizes = [8, 128], strides = [1, 1]} : vector<8x256xf32> to vector<8x128xf32>
    %c0_5 = arith.constant 0 : index
    %c0_6 = arith.constant 0 : index
    %9 = vector.load %arg7[%c0_5, %c0_6] : memref<1x128xf32, #tpu.memory_space<vmem>>, vector<1x128xf32>
    %cst_7 = arith.constant dense<0xFF800000> : vector<128xf32>
    %10 = vector.multi_reduction <maximumf>, %7, %cst_7 [0] : vector<8x128xf32> to vector<128xf32>
    %11 = vector.shape_cast %10 : vector<128xf32> to vector<1x128xf32>
    %12 = arith.maximumf %9, %11 : vector<1x128xf32>
    %13 = arith.subf %9, %12 : vector<1x128xf32>
    %14 = math.exp %13 : vector<1x128xf32>
    %15 = vector.broadcast %12 : vector<1x128xf32> to vector<8x128xf32>
    %16 = arith.subf %7, %15 : vector<8x128xf32>
    %17 = math.exp %16 : vector<8x128xf32>
    %c0_8 = arith.constant 0 : index
    %c0_9 = arith.constant 0 : index
    %18 = vector.load %arg8[%c0_8, %c0_9] : memref<1x128xf32, #tpu.memory_space<vmem>>, vector<1x128xf32>
    %19 = arith.mulf %14, %18 : vector<1x128xf32>
    %cst_10 = arith.constant dense<0.000000e+00> : vector<128xf32>
    %20 = vector.multi_reduction <add>, %17, %cst_10 [0] : vector<8x128xf32> to vector<128xf32>
    %21 = vector.shape_cast %20 : vector<128xf32> to vector<1x128xf32>
    %22 = arith.addf %19, %21 : vector<1x128xf32>
    %c0_11 = arith.constant 0 : index
    %c0_12 = arith.constant 0 : index
    %23 = vector.load %arg8[%c0_11, %c0_12] : memref<1x128xf32, #tpu.memory_space<vmem>>, vector<1x128xf32>
    tpu.vector_store %arg8[%c0_11, %c0_12], %22 {strides = array<i32>} : memref<1x128xf32, #tpu.memory_space<vmem>>, vector<1x128xf32>,
    %c0_13 = arith.constant 0 : index
    %c0_14 = arith.constant 0 : index
    %24 = vector.load %arg9[%c0_13, %c0_14] : memref<1x128xf32, #tpu.memory_space<vmem>>, vector<1x128xf32>
    %25 = arith.mulf %14, %24 : vector<1x128xf32>
    %26 = arith.mulf %17, %8 : vector<8x128xf32>
    %cst_15 = arith.constant dense<0.000000e+00> : vector<128xf32>
    %27 = vector.multi_reduction <add>, %26, %cst_15 [0] : vector<8x128xf32> to vector<128xf32>
    %28 = vector.shape_cast %27 : vector<128xf32> to vector<1x128xf32>
    %29 = arith.addf %25, %28 : vector<1x128xf32>
    %c0_16 = arith.constant 0 : index
    %c0_17 = arith.constant 0 : index
    %30 = vector.load %arg9[%c0_16, %c0_17] : memref<1x128xf32, #tpu.memory_space<vmem>>, vector<1x128xf32>
    tpu.vector_store %arg9[%c0_16, %c0_17], %29 {strides = array<i32>} : memref<1x128xf32, #tpu.memory_space<vmem>>, vector<1x128xf32>,
    %c0_18 = arith.constant 0 : index
    %c0_19 = arith.constant 0 : index
    %31 = vector.load %arg7[%c0_18, %c0_19] : memref<1x128xf32, #tpu.memory_space<vmem>>, vector<1x128xf32>
    tpu.vector_store %arg7[%c0_18, %c0_19], %12 {strides = array<i32>} : memref<1x128xf32, #tpu.memory_space<vmem>>, vector<1x128xf32>,
    %c0_i32_20 = arith.constant 0 : i32
    %32 = arith.cmpi eq, %arg2, %c0_i32_20 : i32
    %33 = arith.extui %32 : i1 to i32
    %c0_i32_21 = arith.constant 0 : i32
    %34 = arith.cmpi ne, %33, %c0_i32_21 : i32
    scf.if %34 {
      %c0_22 = arith.constant 0 : index
      %c0_23 = arith.constant 0 : index
      %35 = vector.load %arg9[%c0_22, %c0_23] : memref<1x128xf32, #tpu.memory_space<vmem>>, vector<1x128xf32>
      %c0_24 = arith.constant 0 : index
      %c0_25 = arith.constant 0 : index
      %36 = vector.load %arg8[%c0_24, %c0_25] : memref<1x128xf32, #tpu.memory_space<vmem>>, vector<1x128xf32>
      %37 = arith.divf %35, %36 : vector<1x128xf32>
      %c0_26 = arith.constant 0 : index
      %c0_27 = arith.constant 0 : index
      %38 = vector.load %arg5[%c0_26, %c0_27] : memref<1x128xf32, #tpu.memory_space<vmem>>, vector<1x128xf32>
      %39 = arith.addf %37, %38 : vector<1x128xf32>
      %40 = vector.shape_cast %39 : vector<1x128xf32> to vector<1x1x128xf32>
      %c0_28 = arith.constant 0 : index
      %c0_29 = arith.constant 0 : index
      %c0_30 = arith.constant 0 : index
      %41 = vector.load %arg6[%c0_28, %c0_29, %c0_30] : memref<1x1x128xf32, #tpu.memory_space<vmem>>, vector<1x1x128xf32>
      tpu.vector_store %arg6[%c0_28, %c0_29, %c0_30], %40 {strides = array<i32>} : memref<1x1x128xf32, #tpu.memory_space<vmem>>, vector<1x1x128xf32>,
    } else {
    }
    return
  }
  func.func @transform_0(%arg0: i32, %arg1: i32, %arg2: i32) -> (i32, i32, i32) {
    %c0_i32 = arith.constant 0 : i32
    %c0_i32_0 = arith.constant 0 : i32
    return %arg1, %arg2, %c0_i32 : i32, i32, i32
  }
  func.func @transform_1(%arg0: i32, %arg1: i32, %arg2: i32) -> (i32, i32) {
    %c0_i32 = arith.constant 0 : i32
    %c0_i32_0 = arith.constant 0 : i32
    return %c0_i32, %arg0 : i32, i32
  }
  func.func @transform_2(%arg0: i32, %arg1: i32, %arg2: i32) -> (i32, i32) {
    %c0_i32 = arith.constant 0 : i32
    %c0_i32_0 = arith.constant 0 : i32
    return %c0_i32, %arg0 : i32, i32
  }
  func.func @transform_3(%arg0: i32, %arg1: i32, %arg2: i32) -> (i32, i32, i32) {
    %c0_i32 = arith.constant 0 : i32
    %c0_i32_0 = arith.constant 0 : i32
    return %arg1, %c0_i32, %arg0 : i32, i32, i32
  }
}

</mosaic_0001>

<bundles_post_ra>
// kernel: tpu_custom_call.1
= control target key start
LH: loop header
LB: loop body
LE: loop exit
PB: predicated region body
PF: predicated region fallthrough
CT: control target
= control target key end

     0   :  { %8 = vsyncpa [#allocation6], 0  ;;  %s931_s0 = inlined_call_operand.hbm [shape: bf16[2,8,32], index: 0, kind: input, shape index: {}]   ;;  %s932_s1 = inlined_call_operand.hbm [shape: bf16[32,256], index: 1, kind: input, shape index: {}]   ;;  %s933_s2 = inlined_call_operand.vmem [shape: f32[1,128], index: 2, kind: input, shape index: {}]   ;;  %s934_s3 = inlined_call_operand.hbm [shape: f32[2,1,128], index: 3, kind: output, shape index: {}]  }
   0x1   :  { %10 = vsyncpa [#allocation6 + $0x1], 0 }
   0x2   :  { %11 = vsyncpa [#allocation9], 0 }
   0x3   :  { %12 = vsyncpa [#allocation7], 0 }
   0x4   :  { %14 = vsyncpa [#allocation7 + $0x1], 0  ;;  %s784_s12 = smov 0   ;;  %s786_s13 = smov 0  }
   0x5   :  { %s788_s14 = smov 0   ;;  %s790_s15 = smov 0  }
   0x6   :  { %s792_s16 = smov 0   ;;  %s794_s17 = smov 0  }
   0x7 LB: > { %s493_s18 = sadd.s32 4294967295, %s757_s17   ;;  %p495_p0 = scmp.ge.s32.totalorder %s757_s17, 1  ;;  %s757_s17 = sphi %s794_s17, %s20_s17   ;;  %s753_s16 = sphi %s792_s16, %s945_s16   ;;  %s749_s15 = sphi %s790_s15, %s944_s15   ;;  %s745_s14 = sphi %s788_s14, %s943_s14   ;;  %s741_s13 = sphi %s786_s13, %s942_s13   ;;  %s737_s12 = sphi %s784_s12, %s941_s12  }
   0x8   : > { %p816_p1 = scmp.eq.s32.totalorder %s493_s18, 0  ;;  %p152_p2 = scmp.lt.s32.totalorder %s757_s17, 3 }
   0x9   : > { %s166_s22 = sshll.u32 %s932_s1, 4  ;;  %s759_s24 = smov [#allocation8]   ;;  %s167_s22 = int_to_ptr.hbm [resolvable:$true] %s166_s22 }
   0xa   : > { %p824_p3 = pnand %p495_p0, %p152_p2  ;;  %s168_s25 = sshll.u32 %s759_s24, 4  ;;  %s169_s25 = int_to_ptr.vmem [resolvable:$true] %s168_s25 }
   0xb   : > { %p498_p6 = scmp.ge.s32.totalorder %s757_s17, 2  ;;  %s760_s26 = smov 128  }
   0xc   : > { %p536_p4 = pneg %p824_p3  ;;  %s761_s27 = smov 8  }
   0xd   : > { %s494_s28 = sadd.s32 4294967294, %s757_s17   ;;  %s35_s29 = sadd.s32 1, %s753_s16 }
   0xe   : > { %p537_p5 = pnand %p536_p4, %p816_p1  ;;  %s48_s30 = sadd.s32 1, %s745_s14 }
   0xf   : > { %p37_p7 = scmp.ge.s32.totalorder %s35_s29, 2  ;;  %p55_p8 = scmp.ne.s32.totalorder %s745_s14, %s741_s13 }
  0x10   : > { %539 = dma.hbm_to_vmem [thread:$0]  (!%p537_p5), %s167_s22, 512, %s169_s25, [#allocation9], %s760_s26, %s760_s26, %s761_s27  }
  0x11   : > { %p56_p9 = scmp.eq.s32.totalorder %s757_s17, 0  ;;  %p61_p10 = scmp.ne.s32.totalorder %s741_s13, %s737_s12 }
  0x12   : > { %s947_s29 = smov (%p37_p7, %s35_s29), 0  ;;  %p139_p13 = scmp.eq.s32.totalorder %s493_s18, 1 }
  0x13   : > { %p843_p11 = por %p56_p9, %p55_p8  ;;  %p849_p12 = por %p816_p1, %p61_p10 }
  0x14   : > { %s43_s6 = ssub.s32 %s753_s16, %s947_s29  ;;  %p145_p2 = scmp.eq.s32.totalorder %s494_s28, 1 }
  0x15   : > { %p46_p0 = scmp.eq.s32.totalorder %s43_s6, 0  ;;  %p855_p4 = por %p139_p13, %p55_p8 }
  0x16   : > { %p549_p5 = scmp.lt.s32.totalorder %s757_s17, 2  ;;  %p863_p7 = por %p145_p2, %p61_p10 }
  0x17   : > { %s861_s8 = scalar_select %p46_p0, %s745_s14, %s48_s30  }
  0x18   : > { %s188_s10 = sand.u32 1, %s745_s14   ;;  %s500_s20 = sshll.u32 %s753_s16, 2 }
  0x19   : > { %s499_s11 = sshll.u32 %s188_s10, 2  ;;  %s197_s18 = scalar_lea.hbm %s931_s0, %s500_s20 }
  0x1a   : > { %s192_s24 = scalar_lea.vmem [#allocation5], %s499_s11  ;;  %s199_s26 = sshll.u32 %s197_s18, 4  ;;  %s200_s26 = int_to_ptr.hbm [resolvable:$true] %s199_s26 }
  0x1b   : > { %s201_s25 = sshll.u32 %s192_s24, 4  ;;  %p541_p8 = pnand %p549_p5, %p843_p11  ;;  %s202_s25 = int_to_ptr.vmem [resolvable:$true] %s201_s25 }
  0x1c   : > { %s189_s27 = scalar_lea.sflag [#allocation6], %s188_s10  ;;  %210 = sbr.rel (%p824_p3) target bundleno = 246 (0xf6), region = 32 }
  0x1d   : > { %543 = dma.hbm_to_vmem [thread:$0]  (!%p541_p8), %s200_s26, 64, %s202_s25, %s189_s27  }
  0x1e   : > { %s877_s28 = sand.u32 (!%p824_p3), 1, %s741_s13  }
  0x1f   : > { %s502_s30 = sshll.u32 (!%p824_p3), %s877_s28, 2  ;;  %s213_s6 = scalar_lea.sflag (!%p824_p3), [#allocation6], %s877_s28 }
  0x20   : > { %s216_s11 = scalar_lea.vmem (!%p824_p3), [#allocation5], %s502_s30 }
  0x21   : > { %724 = dma.done.wait (%p849_p12), %s213_s6, 64  }
  0x22   : > { %726 = vsyncadd (%p849_p12), %s213_s6, 4294967232 }
  0x23   : > { %728 = dma.done.wait (%p816_p1), [#allocation9], 512  }
  0x24   : > { %730 = vsyncadd (%p816_p1), [#allocation9], 4294966784  ;;  %v762_v0 = vmov -inf   ;;  %v514_v1 = vld [vmem:[#allocation8 + $0x10] sm:$0xf]  ;;  %vm284_vm0 = vcmask 261120   ;;  %s386_s4 = scalar_lea.hbm %s934_s3, %s749_s15 }
  0x25   : > { %256 = vst [vmem:[#allocation2] sm:$0x1] %v762_v0  ;;  %v527_v2 = vld [vmem:[#allocation8 + $0x14] sm:$0xf0]  ;;  %v506_v3 = vld [vmem:[#allocation8] sm:$0xf] }
  0x26   : > { %v515_v4 = vor.u32 %v527_v2, %v514_v1  ;;  %v525_v5 = vld [vmem:[#allocation8 + $0x4] sm:$0xf0]  ;;  %v526_v6 = vld [vmem:[#allocation8 + $0x14] sm:$0xf]  ;;  %v516_v7 = vld [vmem:[#allocation8 + $0x18] sm:$0xf0] }
  0x27   : > { %v524_v8 = vld [vmem:[#allocation8 + $0x4] sm:$0xf]  ;;  %v508_v9 = vld [vmem:[#allocation8 + $0x8] sm:$0xf0]  ;;  %v507_v10 = vor.u32 %v525_v5, %v506_v3  ;;  %v519_v11 = vor.u32 %v526_v6, %v516_v7  ;;  %v259_v13 = vld [vmem:[%s216_s11] sm:$0xf] }
  0x28   : > { %294 = vmatpush.bf16.msra.mxu0 %v515_v4  ;;  %v511_v12 = vor.u32 %v524_v8, %v508_v9  ;;  %v763_v14 = vmov 0.0   ;;  %v373_v1 = vld [vmem:[%s933_s2] sm:$0x1]  ;;  %s246_s20 = scalar_lea.vmem [#allocation10], %s877_s28  ;;  %s390_s22 = sshll.u32 %s386_s4, 4  ;;  %s391_s22 = int_to_ptr.hbm [resolvable:$true] %s390_s22 }
  0x29   : > { %307 = vmatpush.bf16.msra.mxu1 %v519_v11  ;;  %257 = vst [vmem:[#allocation3] sm:$0x1] %v763_v14  ;;  %s388_s21 = sshll.u32 %s246_s20, 4  ;;  %s377_s15 = scalar_lea.sflag [#allocation7], %s877_s28  ;;  %s389_s21 = int_to_ptr.vmem [resolvable:$true] %s388_s21 }
  0x2a   : > { %258 = vst [vmem:[#allocation4] sm:$0x1] %v763_v14  ;;  %s685_s18 = sshra.s32 %s391_s22, 4  ;;  %s691_s27 = scalar_lea.hbm %s934_s3, 2  ;;  %s686_s18 = int_to_ptr.hbm [resolvable:$true] %s685_s18 }
  0x2b   : > { %s687_s24 = scalar_lea.hbm %s686_s18, 1  ;;  %p692_p10 = scmp.lt.s32.totalorder %s686_s18, %s934_s3 }
  0x2c   : > { %295 = vmatpush.bf16.msra.mxu0 %v507_v10  ;;  %v314_v23 = vld [vmem:[#allocation2] sm:$0x1]  ;;  %p688_p1 = scmp.ne.s32.totalorder %s686_s18, %s687_s24  ;;  %p693_p11 = scmp.lt.s32.totalorder %s691_s27, %s687_s24 }
  0x2d   : > { %308 = vmatpush.bf16.msra.mxu1 %v511_v12 }
  0x2e   : > { %p689_p3 = pnand %p688_p1, %p855_p4  ;;  %p694_p12 = por %p693_p11, %p692_p10 }
  0x2f   : > { %520 = vmatmul.msk.bf16.vlgmr.msra.gmra.mxu0 %vm284_vm0, %v259_v13 }
  0x30   : > { %521 = vmatmul.msk.bf16.vlgmr.msra.gmra.mxu1 %vm284_vm0, %v259_v13  ;;  %v331_v42 = vld [vmem:[#allocation3] sm:$0x1]  ;;  %p690_p9 = pneg %p689_p3 }
  0x31   : > { %v341_v45 = vld [vmem:[#allocation4] sm:$0x1] }
  0x32   : > { %p695_p13 = pnand %p694_p12, %p690_p9 }
  0xac   : > { %v297_v15 = vpop.f32.mrf.mxu0 }
  0xad   : > { %v315_v16 = vrot.slane %v297_v15, 4  ;;  %v310_v17 = vpop.f32.mrf.mxu1 }
  0xaf   : > { %v316_v18 = vmax.f32 %v297_v15, %v315_v16 }
  0xb1   : > { %v317_v19 = vrot.slane %v316_v18, 2 }
  0xb3   : > { %v318_v20 = vmax.f32 %v316_v18, %v317_v19 }
  0xb4   : > { %v299_v21 = vpop.f32.mrf.mxu0 }
  0xb5   : > { %v319_v22 = vrot.slane %v318_v20, 1  ;;  %v312_v24 = vpop.f32.mrf.mxu1 }
  0xb7   : > { %v320_v25 = vmax.f32 %v318_v20, %v319_v22 }
  0xb9   : > { %v321_v26 = vmax.f32 %v314_v23, %v320_v25 }
  0xbb   : > { %v326_v27 = vperm.slane %v321_v26, 0  ;;  %352 = vst [vmem:[#allocation2] sm:$0x1] %v321_v26  ;;  %v322_v30 = vsub.f32 %v314_v23, %v321_v26 }
  0xbd   : > { %v328_v28 = vsub.f32 %v297_v15, %v326_v27  ;;  %v323_v31 = vmul.f32 1.442695, %v322_v30 }
  0xbf   : > { %v329_v29 = vmul.f32 1.442695, %v328_v28 }
  0xc1   : > { %605 = vpow2.f32 %v329_v29 }
  0xc2   : > { %607 = vpow2.f32 %v323_v31 }
  0xc7   : > { %v606_v32 = vpop.eup %605 }
  0xc8   : > { %v333_v33 = vrot.slane %v606_v32, 4  ;;  %v343_v34 = vmul.f32 %v606_v32, %v310_v17  ;;  %v608_v41 = vpop.eup %607 }
  0xc9   : > { %v332_v47 = vmul.f32 %v608_v41, %v331_v42  ;;  %v342_v50 = vmul.f32 %v608_v41, %v341_v45 }
  0xca   : > { %v334_v35 = vadd.f32 %v606_v32, %v333_v33  ;;  %v344_v36 = vrot.slane %v343_v34, 4 }
  0xcc   : > { %v335_v37 = vrot.slane %v334_v35, 2  ;;  %v345_v38 = vadd.f32 %v344_v36, %v343_v34 }
  0xce   : > { %v336_v39 = vadd.f32 %v335_v37, %v334_v35  ;;  %v346_v40 = vrot.slane %v345_v38, 2 }
  0xd0   : > { %v337_v43 = vrot.slane %v336_v39, 1  ;;  %v347_v44 = vadd.f32 %v346_v40, %v345_v38 }
  0xd2   : > { %v338_v46 = vadd.f32 %v337_v43, %v336_v39  ;;  %v348_v48 = vrot.slane %v347_v44, 1 }
  0xd4   : > { %v339_v49 = vadd.f32 %v338_v46, %v332_v47  ;;  %v349_v51 = vadd.f32 %v348_v48, %v347_v44 }
  0xd6   : > { %340 = vst [vmem:[#allocation3] sm:$0x1] %v339_v49  ;;  %v350_v52 = vadd.f32 %v349_v51, %v342_v50 }
  0xd8   : > { %351 = vst [vmem:[#allocation4] sm:$0x1] %v350_v52 }
  0xdd   : > { %v357_v53 = vld [vmem:[#allocation3] sm:$0x1] }
  0xde   : > { %609 = vrcp.f32 %v357_v53  ;;  %v369_v57 = vand.u32 2147483648, %v357_v53  ;;  %v367_v59 = vand.u32 2147483647, %v357_v53  ;;  %vm363_vm2 = vweird.f32 %v357_v53 }
  0xdf   : > { %v356_v63 = vld [vmem:[#allocation4] sm:$0x1] }
  0xe0   : > { %v370_v61 = vor.u32 1.1754944e-38, %v369_v57  ;;  %vm368_vm4 = vcmp.eq.f32.partialorder %v367_v59, 8.507059e+37 }
  0xe4   : > { %v610_v54 = vpop.eup %609 }
  0xe5   : > { %v359_v55 = vmul.f32 %v610_v54, %v357_v53  ;;  %vm364_vm1 = vweird.f32 %v610_v54 }
  0xe6   : > { %vm365_vm3 = vmor %vm363_vm2, %vm364_vm1 }
  0xe7   : > { %v360_v56 = vsub.f32 1.0, %v359_v55 }
  0xe9   : > { %v361_v58 = vmul.f32 %v610_v54, %v360_v56 }
  0xeb   : > { %v362_v60 = vadd.f32 %v610_v54, %v361_v58 }
  0xed   : > { %v366_v62 = vsel %vm365_vm3, %v610_v54, %v362_v60 }
  0xee   : > { %v371_v0 = vsel %vm368_vm4, %v370_v61, %v366_v62 }
  0xef   : > { %v372_v2 = vmul.f32 %v371_v0, %v356_v63 }
  0xf1   : > { %v374_v3 = vadd.f32 %v373_v1, %v372_v2 }
  0xf3   : > { %375 = vst [vmem:[%s246_s20] sm:$0x1] %v374_v3 }
  0xf4   : > { %698 = shalt.err (!%p695_p13)
}
  0xf5   : > { %534 = dma.vmem_to_hbm [thread:$0]  (%p855_p4), %s389_s21, 16, %s391_s22, %s377_s15  }
  0xf6 PF: > { %s402_s28 = sand.u32 1, %s737_s12   ;;  %p545_p0 = pnand %p498_p6, %p863_p7 }
  0xf7   : > { %s403_s11 = scalar_lea.sflag [#allocation7], %s402_s28 }
  0xf8   : > { %p546_p2 = pneg %p545_p0 }
  0xfa   : > { %732 = dma.done.wait (%p546_p2), %s403_s11, 16  }
  0xfb   : > { %734 = vsyncadd (%p546_p2), %s403_s11, 4294967280  ;;  %s20_s17 = sadd.s32 1, %s757_s17   ;;  %s941_s12 = smov %s741_s13 }
  0xfc   : > { %p17_p5 = scmp.ge.s32.totalorder %s20_s17, 4   ;;  %s942_s13 = smov %s745_s14 }
  0xfd   : > { %s943_s14 = smov %s861_s8  ;;  %s944_s15 = smov %s753_s16 }
  0xfe   : > { %s945_s16 = smov %s947_s29  ;;  %19 = sbr.rel (!%p17_p5) target bundleno = 7 (0x7), region = 93 }
 0x103   :  { %408 = vsyncpa [#allocation6], 1 }
 0x104   :  { %410 = vsyncpa [#allocation6 + $0x1], 1 }
 0x105   :  { %411 = vsyncpa [#allocation9], 1 }
 0x106   :  { %412 = vsyncpa [#allocation7], 1 }
 0x107   :  { %414 = vsyncpa [#allocation7 + $0x1], 1 }

</bundles_post_ra>
